<compile_context>
chip_gen: v7x
topology: tpu7x:2x2x1
jax: 0.10.0
libtpu: 0.0.40
codegen_flags: <defaults>
</compile_context>

<pallas_src>
import functools

import jax
import jax.numpy as jnp
from jax.experimental import pallas as pl
from jax.experimental.pallas import tpu as pltpu


def _attention_kernel(x_ref, wqkv_ref, wo_ref, bo_ref, o_ref, *,
                      seq_len, heads, dim_head, matmul_dtype):
    # x_ref   : (tile_rows, dim)          tile_rows = tile_b * seq_len
    # wqkv_ref: (dim, 3*inner)  wo_ref: (inner, dim)  bo_ref: (1, dim)
    # o_ref   : (tile_rows, dim)
    rows = x_ref.shape[0]
    n = seq_len
    tb = rows // n
    inner = heads * dim_head

    x2d = x_ref[...]
    if matmul_dtype is not None:
        x2d = x2d.astype(matmul_dtype)

    # One wide QKV projection for all heads.  `scale` is already folded into
    # the Q columns and the weights are already in matmul_dtype (wrapper).
    qkv = jnp.dot(x2d, wqkv_ref[...], preferred_element_type=jnp.float32)
    qkv_mm = qkv.astype(matmul_dtype) if matmul_dtype is not None else qkv

    # Per-head attention, statically unrolled over the small head count.
    head_outs = []
    for h in range(heads):
        lo, hi = h * dim_head, (h + 1) * dim_head
        qh = qkv_mm[:, 0 * inner + lo:0 * inner + hi].reshape(tb, n, dim_head)
        kh = qkv_mm[:, 1 * inner + lo:1 * inner + hi].reshape(tb, n, dim_head)
        vh = qkv_mm[:, 2 * inner + lo:2 * inner + hi].reshape(tb, n, dim_head)

        dots = jnp.einsum('bid,bjd->bij', qh, kh,
                          preferred_element_type=jnp.float32)
        # Softmax in f32 with an exact denominator (parity with the reference).
        dots = dots - jnp.max(dots, axis=-1, keepdims=True)
        e = jnp.exp(dots)
        attn = e / jnp.sum(e, axis=-1, keepdims=True)
        if matmul_dtype is not None:
            attn = attn.astype(matmul_dtype)

        oh = jnp.einsum('bij,bjd->bid', attn, vh,
                        preferred_element_type=jnp.float32)    # (tb, n, dh)
        head_outs.append(oh.reshape(rows, dim_head))

    # Fused (rows, inner) @ (inner, dim) output projection + bias, one store.
    out2d = jnp.concatenate(head_outs, axis=-1) if heads > 1 else head_outs[0]
    if matmul_dtype is not None:
        out2d = out2d.astype(matmul_dtype)
    out = jnp.dot(out2d, wo_ref[...], preferred_element_type=jnp.float32)
    out = out + bo_ref[...]                                    # (1, dim) bcast
    o_ref[...] = out.astype(o_ref.dtype)


def _vmem_budget_and_limit():
    """Generation-aware per-step working-set budget and scoped-VMEM limit."""
    try:
        cap = int(getattr(pltpu.get_tpu_info(), "vmem_capacity_bytes", 0) or 0)
    except Exception:
        cap = 0
    if cap <= 0:
        cap = 64 * 1024 * 1024                    # be conservative: assume v7x
    if cap <= 64 * 1024 * 1024:                   # v7x-class: 64 MiB per TC
        return 18 * 1024 * 1024, 48 * 1024 * 1024
    return 48 * 1024 * 1024, 96 * 1024 * 1024     # v5e / v6e: 128 MiB


def _choose_tile_b(b, n, dim, heads, dim_head, *, matmul_dtype,
                   vmem_budget_bytes, target_rows=2048):
    """Largest batch tile that (a) divides b, (b) keeps the block's second-
    minor dim legal (multiple of 8 rows, or the whole array), (c) targets
    ~target_rows MXU rows, (d) fits the VMEM budget, and (e) leaves >= 2 grid
    steps when possible so both v7x TensorCores get work."""
    inner = heads * dim_head
    mmb = 2 if matmul_dtype is not None else 4

    def vmem_bytes(tb):
        rows = tb * n
        io = 2 * 2 * rows * dim * 4                          # dbl-buffered x/out
        w = 2 * (dim * 3 * inner + inner * dim + dim) * 4    # resident weights
        x_mm = rows * dim * mmb                              # cast x copy
        qkv = rows * 3 * inner * (4 + mmb)                   # f32 result + cast
        attn_tmp = heads * tb * n * n * (3 * 4 + mmb)        # dots / e / attn
        head_out = heads * rows * dim_head * 4
        out2d = rows * inner * (4 + mmb)
        proj = rows * dim * 4
        return io + w + x_mm + qkv + attn_tmp + head_out + out2d + proj

    cands = sorted(t for t in range(1, b + 1)
                   if b % t == 0 and ((t * n) % 8 == 0 or t == b))
    for need_multi_step in (True, False):
        fits = [t for t in cands
                if (not need_multi_step or b // t >= 2)
                and t * n <= max(n, target_rows)
                and vmem_bytes(t) <= vmem_budget_bytes]
        if fits:
            return max(fits)
    return cands[0]


def attention_pallas(x, w_qkv_t, w_out_t, b_out, *, heads, dim_head,
                     matmul_dtype=jnp.bfloat16):
    b, n, dim = x.shape
    inner = heads * dim_head
    assert w_qkv_t.shape == (dim, 3 * inner)
    assert w_out_t.shape == (inner, dim)
    scale = dim_head ** -0.5

    # One-time weight transforms (constant folds for fixed parameters):
    #   * fold `scale` into the Q columns -> no per-score multiply in-kernel
    #   * pre-cast matmul operand weights to the MXU dtype (bf16 by default)
    col_scale = jnp.concatenate([
        jnp.full((inner,), scale, dtype=w_qkv_t.dtype),
        jnp.ones((2 * inner,), dtype=w_qkv_t.dtype)])
    wqkv_p = w_qkv_t * col_scale[None, :]
    wo_p = w_out_t
    if matmul_dtype is not None:
        wqkv_p = wqkv_p.astype(matmul_dtype)
        wo_p = wo_p.astype(matmul_dtype)
    bo = b_out.reshape(1, dim).astype(jnp.float32)

    vmem_budget, vmem_limit = _vmem_budget_and_limit()
    tile_b = _choose_tile_b(b, n, dim, heads, dim_head,
                            matmul_dtype=matmul_dtype,
                            vmem_budget_bytes=vmem_budget)
    tile_rows = tile_b * n

    kernel = functools.partial(_attention_kernel, seq_len=n, heads=heads,
                               dim_head=dim_head, matmul_dtype=matmul_dtype)

    x2d = x.reshape(b * n, dim)         # free contiguous reshape in the wrapper
    out2d = pl.pallas_call(
        kernel,
        out_shape=jax.ShapeDtypeStruct((b * n, dim), x.dtype),
        grid_spec=pltpu.PrefetchScalarGridSpec(
            num_scalar_prefetch=0,
            grid=(b // tile_b,),
            in_specs=[
                # x: one (tile_rows, dim) row-block per step.
                pl.BlockSpec((tile_rows, dim), lambda i: (i, 0)),
                # Weights / bias: constant block index -> fetched once and
                # kept VMEM-resident across all grid steps.
                pl.BlockSpec((dim, 3 * inner), lambda i: (0, 0)),
                pl.BlockSpec((inner, dim), lambda i: (0, 0)),
                pl.BlockSpec((1, dim), lambda i: (0, 0)),
            ],
            out_specs=pl.BlockSpec((tile_rows, dim), lambda i: (i, 0)),
        ),
        compiler_params=pltpu.CompilerParams(
            dimension_semantics=("parallel",),
            vmem_limit_bytes=vmem_limit),
    )(x2d, wqkv_p, wo_p, bo)
    return out2d.reshape(b, n, dim)


def attention_reference(x, w_qkv_t, w_out_t, b_out, *, heads, dim_head):
    """Pure-JAX f32 reference matching the PyTorch forward."""
    b, n, dim = x.shape
    inner = heads * dim_head
    qkv = x @ w_qkv_t
    q, k, v = jnp.split(qkv, 3, axis=-1)
    to_heads = lambda t: t.reshape(b, n, heads, dim_head).transpose(0, 2, 1, 3)
    q, k, v = map(to_heads, (q, k, v))
    dots = jnp.einsum('bhid,bhjd->bhij', q, k) * dim_head ** -0.5
    attn = jax.nn.softmax(dots, axis=-1)
    out = jnp.einsum('bhij,bhjd->bhid', attn, v)
    out = out.transpose(0, 2, 1, 3).reshape(b, n, inner)
    return out @ w_out_t + b_out


if __name__ == "__main__":
    # Small shapes consistent with the module: dim=32, heads=2, dim_head=16.
    # Batch 16 so the grid has >= 2 steps and the row blocks are 8-aligned.
    B, N, DIM = 16, 8, 32
    HEADS, DIM_HEAD = 2, 16
    INNER = HEADS * DIM_HEAD

    key = jax.random.PRNGKey(0)
    kx, kqkv, kwo, kbo = jax.random.split(key, 4)
    x = jax.random.normal(kx, (B, N, DIM), dtype=jnp.float32)
    w_qkv_t = jax.random.normal(kqkv, (DIM, 3 * INNER), dtype=jnp.float32) * 0.1
    w_out_t = jax.random.normal(kwo, (INNER, DIM), dtype=jnp.float32) * 0.1
    b_out = jax.random.normal(kbo, (DIM,), dtype=jnp.float32) * 0.1

    out = attention_pallas(x, w_qkv_t, w_out_t, b_out,
                           heads=HEADS, dim_head=DIM_HEAD)
    out = jax.block_until_ready(out)

    ref = attention_reference(x, w_qkv_t, w_out_t, b_out,
                              heads=HEADS, dim_head=DIM_HEAD)
    assert out.shape == (B, N, DIM)
    # Tolerance accounts for the bf16 MXU operand path (softmax/accum are f32).
    assert jnp.allclose(out, ref, atol=3e-2, rtol=3e-2), "mismatch vs reference"
    print("KERNEL_OK")
</pallas_src>

<mosaic_0001>
module attributes {stable_mosaic.version = 11 : i64} {
  func.func @_attention_kernel(%arg0: i32, %arg1: memref<64x32xf32, #tpu.memory_space<vmem>>, %arg2: memref<32x96xbf16, #tpu.memory_space<vmem>>, %arg3: memref<32x32xbf16, #tpu.memory_space<vmem>>, %arg4: memref<1x32xf32, #tpu.memory_space<vmem>>, %arg5: memref<64x32xf32, #tpu.memory_space<vmem>>) attributes {dimension_semantics = [#tpu.dimension_semantics<parallel>], iteration_bounds = array<i64: 2>, scalar_prefetch = 0 : i64, scratch_operands = 0 : i64, tpu.core_type = #tpu.core_type<tc>, window_params = [{transform_indices = @transform_0, window_bounds = array<i64: 64, 32>}, {pipeline_mode = #tpu.pipeline_mode<synchronous>, transform_indices = @transform_1, window_bounds = array<i64: 32, 96>}, {pipeline_mode = #tpu.pipeline_mode<synchronous>, transform_indices = @transform_2, window_bounds = array<i64: 32, 32>}, {pipeline_mode = #tpu.pipeline_mode<synchronous>, transform_indices = @transform_3, window_bounds = array<i64: 1, 32>}, {transform_indices = @transform_4, window_bounds = array<i64: 64, 32>}]} {
    %c0 = arith.constant 0 : index
    %c0_0 = arith.constant 0 : index
    %0 = vector.load %arg1[%c0, %c0_0] : memref<64x32xf32, #tpu.memory_space<vmem>>, vector<64x32xf32>
    %1 = arith.truncf %0 : vector<64x32xf32> to vector<64x32xbf16>
    %c0_1 = arith.constant 0 : index
    %c0_2 = arith.constant 0 : index
    %2 = vector.load %arg2[%c0_1, %c0_2] : memref<32x96xbf16, #tpu.memory_space<vmem>>, vector<32x96xbf16>
    %cst = arith.constant dense<0.000000e+00> : vector<64x96xf32>
    %3 = tpu.matmul %1, %2, %cst {dimension_numbers = #tpu.dot_dimension_numbers<[1], [0], [0], [1], [0, 0, 1, 1], [], []>} : vector<64x32xbf16>, vector<32x96xbf16>, vector<64x96xf32> -> vector<64x96xf32>
    %4 = arith.truncf %3 : vector<64x96xf32> to vector<64x96xbf16>
    %5 = vector.extract_strided_slice %4 {offsets = [0, 0], sizes = [64, 16], strides = [1, 1]} : vector<64x96xbf16> to vector<64x16xbf16>
    %6 = vector.shape_cast %5 : vector<64x16xbf16> to vector<8x8x16xbf16>
    %7 = vector.extract_strided_slice %4 {offsets = [0, 32], sizes = [64, 16], strides = [1, 1]} : vector<64x96xbf16> to vector<64x16xbf16>
    %8 = vector.shape_cast %7 : vector<64x16xbf16> to vector<8x8x16xbf16>
    %9 = vector.extract_strided_slice %4 {offsets = [0, 64], sizes = [64, 16], strides = [1, 1]} : vector<64x96xbf16> to vector<64x16xbf16>
    %10 = vector.shape_cast %9 : vector<64x16xbf16> to vector<8x8x16xbf16>
    "tpu.trace_start"() <{level = 10 : i32, message = "bid,bjd->bij"}> : () -> ()
    %cst_3 = arith.constant dense<0.000000e+00> : vector<8x8x8xf32>
    %11 = tpu.matmul %6, %8, %cst_3 {dimension_numbers = #tpu.dot_dimension_numbers<[2], [2], [1], [1], [0, 0, 0, 1, 1, 1], [0], [0]>} : vector<8x8x16xbf16>, vector<8x8x16xbf16>, vector<8x8x8xf32> -> vector<8x8x8xf32>
    "tpu.trace_stop"() : () -> ()
    %cst_4 = arith.constant dense<0xFF800000> : vector<8x8xf32>
    %12 = vector.multi_reduction <maximumf>, %11, %cst_4 [2] : vector<8x8x8xf32> to vector<8x8xf32>
    %13 = vector.shape_cast %12 : vector<8x8xf32> to vector<8x8x1xf32>
    %14 = vector.broadcast %13 : vector<8x8x1xf32> to vector<8x8x8xf32>
    %15 = arith.subf %11, %14 : vector<8x8x8xf32>
    %16 = math.exp %15 : vector<8x8x8xf32>
    %cst_5 = arith.constant dense<0.000000e+00> : vector<8x8xf32>
    %17 = vector.multi_reduction <add>, %16, %cst_5 [2] : vector<8x8x8xf32> to vector<8x8xf32>
    %18 = vector.shape_cast %17 : vector<8x8xf32> to vector<8x8x1xf32>
    %19 = vector.broadcast %18 : vector<8x8x1xf32> to vector<8x8x8xf32>
    %20 = arith.divf %16, %19 : vector<8x8x8xf32>
    %21 = arith.truncf %20 : vector<8x8x8xf32> to vector<8x8x8xbf16>
    "tpu.trace_start"() <{level = 10 : i32, message = "bij,bjd->bid"}> : () -> ()
    %cst_6 = arith.constant dense<0.000000e+00> : vector<8x8x16xf32>
    %22 = tpu.matmul %21, %10, %cst_6 {dimension_numbers = #tpu.dot_dimension_numbers<[2], [1], [1], [2], [0, 0, 0, 1, 1, 2], [0], [0]>} : vector<8x8x8xbf16>, vector<8x8x16xbf16>, vector<8x8x16xf32> -> vector<8x8x16xf32>
    "tpu.trace_stop"() : () -> ()
    %23 = vector.shape_cast %22 : vector<8x8x16xf32> to vector<64x16xf32>
    %24 = vector.extract_strided_slice %4 {offsets = [0, 16], sizes = [64, 16], strides = [1, 1]} : vector<64x96xbf16> to vector<64x16xbf16>
    %25 = vector.shape_cast %24 : vector<64x16xbf16> to vector<8x8x16xbf16>
    %26 = vector.extract_strided_slice %4 {offsets = [0, 48], sizes = [64, 16], strides = [1, 1]} : vector<64x96xbf16> to vector<64x16xbf16>
    %27 = vector.shape_cast %26 : vector<64x16xbf16> to vector<8x8x16xbf16>
    %28 = vector.extract_strided_slice %4 {offsets = [0, 80], sizes = [64, 16], strides = [1, 1]} : vector<64x96xbf16> to vector<64x16xbf16>
    %29 = vector.shape_cast %28 : vector<64x16xbf16> to vector<8x8x16xbf16>
    "tpu.trace_start"() <{level = 10 : i32, message = "bid,bjd->bij"}> : () -> ()
    %cst_7 = arith.constant dense<0.000000e+00> : vector<8x8x8xf32>
    %30 = tpu.matmul %25, %27, %cst_7 {dimension_numbers = #tpu.dot_dimension_numbers<[2], [2], [1], [1], [0, 0, 0, 1, 1, 1], [0], [0]>} : vector<8x8x16xbf16>, vector<8x8x16xbf16>, vector<8x8x8xf32> -> vector<8x8x8xf32>
    "tpu.trace_stop"() : () -> ()
    %cst_8 = arith.constant dense<0xFF800000> : vector<8x8xf32>
    %31 = vector.multi_reduction <maximumf>, %30, %cst_8 [2] : vector<8x8x8xf32> to vector<8x8xf32>
    %32 = vector.shape_cast %31 : vector<8x8xf32> to vector<8x8x1xf32>
    %33 = vector.broadcast %32 : vector<8x8x1xf32> to vector<8x8x8xf32>
    %34 = arith.subf %30, %33 : vector<8x8x8xf32>
    %35 = math.exp %34 : vector<8x8x8xf32>
    %cst_9 = arith.constant dense<0.000000e+00> : vector<8x8xf32>
    %36 = vector.multi_reduction <add>, %35, %cst_9 [2] : vector<8x8x8xf32> to vector<8x8xf32>
    %37 = vector.shape_cast %36 : vector<8x8xf32> to vector<8x8x1xf32>
    %38 = vector.broadcast %37 : vector<8x8x1xf32> to vector<8x8x8xf32>
    %39 = arith.divf %35, %38 : vector<8x8x8xf32>
    %40 = arith.truncf %39 : vector<8x8x8xf32> to vector<8x8x8xbf16>
    "tpu.trace_start"() <{level = 10 : i32, message = "bij,bjd->bid"}> : () -> ()
    %cst_10 = arith.constant dense<0.000000e+00> : vector<8x8x16xf32>
    %41 = tpu.matmul %40, %29, %cst_10 {dimension_numbers = #tpu.dot_dimension_numbers<[2], [1], [1], [2], [0, 0, 0, 1, 1, 2], [0], [0]>} : vector<8x8x8xbf16>, vector<8x8x16xbf16>, vector<8x8x16xf32> -> vector<8x8x16xf32>
    "tpu.trace_stop"() : () -> ()
    %42 = vector.shape_cast %41 : vector<8x8x16xf32> to vector<64x16xf32>
    %43 = tpu.concatenate %23, %42 in 1 : vector<64x16xf32>, vector<64x16xf32> -> vector<64x32xf32>
    %44 = arith.truncf %43 : vector<64x32xf32> to vector<64x32xbf16>
    %c0_11 = arith.constant 0 : index
    %c0_12 = arith.constant 0 : index
    %45 = vector.load %arg3[%c0_11, %c0_12] : memref<32x32xbf16, #tpu.memory_space<vmem>>, vector<32x32xbf16>
    %cst_13 = arith.constant dense<0.000000e+00> : vector<64x32xf32>
    %46 = tpu.matmul %44, %45, %cst_13 {dimension_numbers = #tpu.dot_dimension_numbers<[1], [0], [0], [1], [0, 0, 1, 1], [], []>} : vector<64x32xbf16>, vector<32x32xbf16>, vector<64x32xf32> -> vector<64x32xf32>
    %c0_14 = arith.constant 0 : index
    %c0_15 = arith.constant 0 : index
    %47 = vector.load %arg4[%c0_14, %c0_15] : memref<1x32xf32, #tpu.memory_space<vmem>>, vector<1x32xf32>
    %48 = vector.broadcast %47 : vector<1x32xf32> to vector<64x32xf32>
    %49 = arith.addf %46, %48 : vector<64x32xf32>
    %c0_16 = arith.constant 0 : index
    %c0_17 = arith.constant 0 : index
    %50 = vector.load %arg5[%c0_16, %c0_17] : memref<64x32xf32, #tpu.memory_space<vmem>>, vector<64x32xf32>
    tpu.vector_store %arg5[%c0_16, %c0_17], %49 {strides = array<i32>} : memref<64x32xf32, #tpu.memory_space<vmem>>, vector<64x32xf32>,
    return
  }
  func.func @transform_0(%arg0: i32) -> (i32, i32) {
    %c0_i32 = arith.constant 0 : i32
    %c0_i32_0 = arith.constant 0 : i32
    return %arg0, %c0_i32 : i32, i32
  }
  func.func @transform_1(%arg0: i32) -> (i32, i32) {
    %c0_i32 = arith.constant 0 : i32
    %c0_i32_0 = arith.constant 0 : i32
    %c0_i32_1 = arith.constant 0 : i32
    return %c0_i32, %c0_i32_0 : i32, i32
  }
  func.func @transform_2(%arg0: i32) -> (i32, i32) {
    %c0_i32 = arith.constant 0 : i32
    %c0_i32_0 = arith.constant 0 : i32
    %c0_i32_1 = arith.constant 0 : i32
    return %c0_i32, %c0_i32_0 : i32, i32
  }
  func.func @transform_3(%arg0: i32) -> (i32, i32) {
    %c0_i32 = arith.constant 0 : i32
    %c0_i32_0 = arith.constant 0 : i32
    %c0_i32_1 = arith.constant 0 : i32
    return %c0_i32, %c0_i32_0 : i32, i32
  }
  func.func @transform_4(%arg0: i32) -> (i32, i32) {
    %c0_i32 = arith.constant 0 : i32
    %c0_i32_0 = arith.constant 0 : i32
    return %arg0, %c0_i32 : i32, i32
  }
}

</mosaic_0001>

<bundles_post_ra>
// kernel: tpu_custom_call.1
= control target key start
LH: loop header
LB: loop body
LE: loop exit
PB: predicated region body
PF: predicated region fallthrough
CT: control target
= control target key end

     0   :  { %s2800_s15 = smov 0   ;;  %s3263_s0 = inlined_call_operand.vmem [shape: f32[128,32], index: 0, kind: input, shape index: {}]   ;;  %s3264_s1 = inlined_call_operand.vmem [shape: bf16[32,96], index: 1, kind: input, shape index: {}]   ;;  %s3265_s2 = inlined_call_operand.vmem [shape: bf16[32,32], index: 2, kind: input, shape index: {}]   ;;  %s3266_s3 = inlined_call_operand.vmem [shape: f32[1,32], index: 3, kind: input, shape index: {}]   ;;  %s3267_s4 = inlined_call_operand.vmem [shape: f32[128,32], index: 4, kind: output, shape index: {}]  }
   0x1 LB: > { %s2287_s16 = sadd.s32 4294967295, %s2765_s15   ;;  %p2291_p0 = scmp.ge.s32.totalorder %s2765_s15, 1  ;;  %s2765_s15 = sphi %s2800_s15, %s14_s15  }
   0x2   : > { %p163_p1 = scmp.lt.s32.totalorder %s2765_s15, 3 }
   0x4   : > { %p164_p2 = pnand %p2291_p0, %p163_p1 }
   0x5   : > { %v2691_v0 = vld [vmem:[%s3264_s1] sm:$0xff] (!%p164_p2)   ;;  %s2292_s19 = sshll.u32 (!%p164_p2), %s2287_s16, 3  ;;  %v2692_v1 = vld [vmem:[%s3264_s1 + $0x8] sm:$0xff] (!%p164_p2)   ;;  %vm230_vm0 = vcmask (!%p164_p2), 261120   ;;  %v2767_v14 = vmov (!%p164_p2), 0.0   ;;  %vm2768_vm1 = vmmov (!%p164_p2), 0  }
   0x6   : > { %167 = sbr.rel (%p164_p2) target bundleno = 2156 (0x86c), region = 36  ;;  %p190_p3 = scmp.lt.s32.totalorder (!%p164_p2), %s2292_s19, 15  ;;  %2435 = vmatprep.subr.bf16.mxu0 (!%p164_p2), %v2691_v0  ;;  %2651 = vmatprep.subr.bf16.mxu1 (!%p164_p2), %v2691_v0  ;;  %vm334_vm2 = vcmask (!%p164_p2), 130048   ;;  %vm717_vm3 = vcmask (!%p164_p2), 64512   ;;  %vm819_vm4 = vcmask (!%p164_p2), 1043456  }
   0x7   : > { %2436 = vmatpush3.bf16.msra.mxu0 (!%p164_p2), %v2691_v0  ;;  %2653 = vmatpush3.bf16.msra.mxu1 (!%p164_p2), %v2691_v0  ;;  %s2769_s26 = smov (!%p164_p2), 96   ;;  %s2770_s27 = smov (!%p164_p2), 64  }
   0x8   : > { %2437 = vmatprep.subr.bf16.mxu0 (!%p164_p2), %v2692_v1  ;;  %2652 = vmatprep.subr.bf16.mxu1 (!%p164_p2), %v2692_v1  ;;  %s2771_s28 = smov (!%p164_p2), 80   ;;  %s2772_s29 = smov (!%p164_p2), 112  }
   0x9   : > { %s2773_s30 = smov (!%p164_p2), 48   ;;  %s2774_s9 = smov (!%p164_p2), 16  }
   0xb   : > { %2438 = vmatpush3.bf16.msra.mxu0 (!%p164_p2), %v2692_v1  ;;  %2654 = vmatpush3.bf16.msra.mxu1 (!%p164_p2), %v2692_v1 }
   0xc   : > { %2459 = vmatprep.subr.bf16.mxu0 (!%p164_p2), %v2767_v14  ;;  %2447 = vmatprep.subr.bf16.mxu1 (!%p164_p2), %v2767_v14 }
   0xd   : > { %s3269_s19 = smov (!%p190_p3, %s2292_s19), 15 }
   0xe   : > { %s2293_s22 = sshll.u32 %s3269_s19, 3 }
   0xf   : > { %s193_s25 = scalar_lea.vmem %s3263_s0, %s2293_s22  ;;  %s199_s14 = scalar_lea.vmem %s3267_s4, %s2293_s22 }
  0x10   : > { %v202_v2 = vld [vmem:[%s193_s25] sm:$0xff]  ;;  %v203_v3 = vld [vmem:[%s193_s25 + $0x8] sm:$0xff]  ;;  %v204_v4 = vld [vmem:[%s193_s25 + $0x10] sm:$0xff] }
  0x11   : > { %v210_v5 = vpack.c.bf16 %v203_v3, %v202_v2  ;;  %v205_v6 = vld [vmem:[%s193_s25 + $0x18] sm:$0xff]  ;;  %v206_v7 = vld [vmem:[%s193_s25 + $0x20] sm:$0xff]  ;;  %v207_v8 = vld [vmem:[%s193_s25 + $0x28] sm:$0xff] }
  0x12   : > { %v211_v9 = vpack.c.bf16 %v205_v6, %v204_v4  ;;  %v212_v10 = vpack.c.bf16 %v207_v8, %v206_v7  ;;  %v208_v11 = vld [vmem:[%s193_s25 + $0x30] sm:$0xff]  ;;  %v209_v12 = vld [vmem:[%s193_s25 + $0x38] sm:$0xff] }
  0x13   : > { %2439 = vmatprep.mubr.msk.bf16.mxu0 %vm230_vm0, %v210_v5  ;;  %v213_v13 = vpack.c.bf16 %v209_v12, %v208_v11 }
  0x14   : > { %2440 = vmatmul.mubr.msk.bf16.vlgmr.msra.gmra.mrb[0].mxu0 %vm230_vm0, %v211_v9  ;;  %2443 = vmatprep.mubr.msk.bf16.mxu1 %vm230_vm0, %v212_v10 }
  0x15   : > { %2444 = vmatmul.mubr.msk.bf16.vlgmr.msra.gmra.mrb[0].mxu1 %vm230_vm0, %v213_v13  ;;  %2461 = vmatprep.mubr.msk.bf16.mxu0 %vm2768_vm1, %v2767_v14 }
  0x16   : > { %2449 = vmatprep.mubr.msk.bf16.mxu1 %vm2768_vm1, %v2767_v14 }
  0xe7   : > { %v2441_v15 = vpop.f32.mrb[0].mxu0 }
  0xe8   : > { %v2832_v16 = vpack.c.bf16 %v2441_v15, %v2441_v15  ;;  %v277_v17 = vpop.f32.mrb[1].mxu0  ;;  %v2445_v18 = vpop.f32.mrb[0].mxu1 }
  0xe9   : > { %v2834_v19 = vpack.c.bf16 %v277_v17, %v277_v17  ;;  %v2442_v20 = vpop.f32.mrb[2].mxu0  ;;  %v293_v21 = vpop.f32.mrb[1].mxu1  ;;  %v2851_v30 = vpack.c.bf16 %v2445_v18, %v2445_v18 }
  0xea   : > { %429 = vrot.lane.b32.xlu1 %v2832_v16, %s2769_s26  ;;  %v280_v22 = vpop.f32.mrb[3].mxu0  ;;  %v2446_v23 = vpop.f32.mrb[2].mxu1  ;;  %v2838_v25 = vpack.c.bf16 %v2442_v20, %v2442_v20  ;;  %v2846_v28 = vpack.c.bf16 %v293_v21, %v293_v21 }
  0xeb   : > { %332 = vrot.lane.b32.xlu0 %v2834_v19, %s2769_s26  ;;  %v296_v24 = vpop.f32.mrb[3].mxu1  ;;  %v2840_v26 = vpack.c.bf16 %v280_v22, %v280_v22  ;;  %v2848_v29 = vpack.c.bf16 %v2446_v23, %v2446_v23 }
  0xec   : > { %v2843_v27 = vpack.c.bf16 %v296_v24, %v296_v24 }
  0xee   : > { %477 = vrot.lane.b32.xlu1 %v2838_v25, %s2769_s26 }
  0xef   : > { %381 = vrot.lane.b32.xlu0 %v2840_v26, %s2769_s26 }
  0xf2   : > { %573 = vrot.lane.b32.xlu1 %v2843_v27, %s2769_s26 }
  0xf3   : > { %525 = vrot.lane.b32.xlu0 %v2846_v28, %s2769_s26 }
  0xf6   : > { %669 = vrot.lane.b32.xlu1 %v2848_v29, %s2769_s26 }
  0xf7   : > { %621 = vrot.lane.b32.xlu0 %v2851_v30, %s2769_s26 }
 0x15c   : > { %v430_v31 = vpop.permute.xlu1 %429 }
 0x15d   : > { %v435_v32 = vsel %vm334_vm2, %v430_v31, 0  ;;  %v333_v33 = vpop.permute.xlu0 %332 }
 0x15e   : > { %v339_v34 = vsel %vm334_vm2, %v333_v33, 0  ;;  %2460 = vmatpush3.bf16.xpose.msra.mxu0 %v435_v32 }
 0x15f   : > { %2448 = vmatpush3.bf16.xpose.msra.mxu1 %v339_v34  ;;  %2471 = vmatprep.subr.bf16.mxu0 %v2767_v14 }
 0x160   : > { %2453 = vmatprep.subr.bf16.mxu1 %v2767_v14  ;;  %v478_v40 = vpop.permute.xlu1 %477 }
 0x161   : > { %v382_v35 = vpop.permute.xlu0 %381  ;;  %v483_v42 = vsel %vm334_vm2, %v478_v40, 0 }
 0x162   : > { %v387_v37 = vsel %vm334_vm2, %v382_v35, 0 }
 0x164   : > { %v574_v43 = vpop.permute.xlu1 %573 }
 0x165   : > { %2462 = vmatmul.mubr.msk.bf16.vlgmr.msra.gmra.mrb[4].mxu0 %vm334_vm2, %v2832_v16  ;;  %v526_v36 = vpop.permute.xlu0 %525  ;;  %v579_v44 = vsel %vm334_vm2, %v574_v43, 0 }
 0x166   : > { %v531_v38 = vsel %vm334_vm2, %v526_v36, 0  ;;  %2450 = vmatmul.mubr.msk.bf16.vlgmr.msra.gmra.mrb[4].mxu1 %vm334_vm2, %v2834_v19  ;;  %2473 = vmatprep.mubr.msk.bf16.mxu0 %vm2768_vm1, %v2767_v14 }
 0x167   : > { %2454 = vmatpush3.bf16.xpose.msra.mxu1 %v387_v37  ;;  %2472 = vmatpush3.bf16.xpose.msra.mxu0 %v531_v38 }
 0x168   : > { %2455 = vmatprep.mubr.msk.bf16.mxu1 %vm2768_vm1, %v2767_v14  ;;  %2465 = vmatprep.subr.bf16.mxu1 %v2767_v14  ;;  %v670_v45 = vpop.permute.xlu1 %669 }
 0x169   : > { %v622_v39 = vpop.permute.xlu0 %621  ;;  %2483 = vmatprep.subr.bf16.mxu0 %v2767_v14  ;;  %v675_v46 = vsel %vm334_vm2, %v670_v45, 0 }
 0x16a   : > { %v627_v41 = vsel %vm334_vm2, %v622_v39, 0 }
 0x16e   : > { %2456 = vmatmul.mubr.msk.bf16.vlgmr.msra.gmra.mrb[8].mxu1 %vm334_vm2, %v2840_v26  ;;  %2474 = vmatmul.mubr.msk.bf16.vlgmr.msra.gmra.mrb[8].mxu0 %vm334_vm2, %v2846_v28 }
 0x16f   : > { %2466 = vmatpush3.bf16.xpose.msra.mxu1 %v483_v42  ;;  %2484 = vmatpush3.bf16.xpose.msra.mxu0 %v627_v41 }
 0x170   : > { %2467 = vmatprep.mubr.msk.bf16.mxu1 %vm2768_vm1, %v2767_v14  ;;  %2485 = vmatprep.mubr.msk.bf16.mxu0 %vm2768_vm1, %v2767_v14 }
 0x171   : > { %2477 = vmatprep.subr.bf16.mxu1 %v2767_v14  ;;  %2495 = vmatprep.subr.bf16.mxu0 %v2767_v14 }
 0x176   : > { %2468 = vmatmul.mubr.msk.bf16.vlgmr.msra.gmra.mrb[12].mxu1 %vm334_vm2, %v2838_v25  ;;  %2486 = vmatmul.mubr.msk.bf16.vlgmr.msra.gmra.mrb[12].mxu0 %vm334_vm2, %v2851_v30 }
 0x177   : > { %2478 = vmatpush3.bf16.xpose.msra.mxu1 %v579_v44  ;;  %2479 = vmatprep.mubr.msk.bf16.mxu1 %vm2768_vm1, %v2767_v14 }
 0x178   : > { %2489 = vmatprep.subr.bf16.mxu1 %v2767_v14  ;;  %2497 = vmatprep.mubr.msk.bf16.mxu0 %vm2768_vm1, %v2767_v14 }
 0x17e   : > { %2480 = vmatmul.mubr.msk.bf16.vlgmr.msra.gmra.mrb[16].mxu1 %vm334_vm2, %v2843_v27 }
 0x17f   : > { %2490 = vmatpush3.bf16.xpose.msra.mxu1 %v675_v46  ;;  %2491 = vmatprep.mubr.msk.bf16.mxu1 %vm2768_vm1, %v2767_v14 }
 0x180   : > { %2501 = vmatprep.subr.bf16.mxu1 %v2767_v14 }
 0x186   : > { %2492 = vmatmul.mubr.msk.bf16.vlgmr.msra.gmra.mrb[20].mxu1 %vm334_vm2, %v2848_v29 }
 0x187   : > { %2503 = vmatprep.mubr.msk.bf16.mxu1 %vm2768_vm1, %v2767_v14 }
 0x238   : > { %v471_v47 = vpop.f32.mrb[4].mxu0 }
 0x239   : > { %v375_v48 = vpop.f32.mrb[4].mxu1  ;;  %v2463_v49 = vpop.f32.mrb[5].mxu0  ;;  %v724_v50 = vsel %vm717_vm3, %v471_v47, -inf }
 0x23a   : > { %v2451_v51 = vpop.f32.mrb[5].mxu1  ;;  %v474_v52 = vpop.f32.mrb[6].mxu0  ;;  %725 = vmax.xlane.f32.xlu0 %v724_v50  ;;  %v718_v56 = vsel %vm717_vm3, %v375_v48, -inf }
 0x23b   : > { %v378_v53 = vpop.f32.mrb[6].mxu1  ;;  %v2464_v54 = vpop.f32.mrb[7].mxu0 }
 0x23c   : > { %v2452_v55 = vpop.f32.mrb[7].mxu1 }
 0x23e   : > { %719 = vmax.xlane.f32.xlu0 %v718_v56 }
 0x241   : > { %v2906_v57 = vpop.f32.mrb[8].mxu1  ;;  %v567_v58 = vpop.f32.mrb[8].mxu0 }
 0x242   : > { %v2457_v59 = vpop.f32.mrb[9].mxu1  ;;  %v2475_v60 = vpop.f32.mrb[9].mxu0  ;;  %v730_v61 = vsel %vm717_vm3, %v567_v58, -inf  ;;  %v721_v2 = vsel %vm717_vm3, %v2906_v57, -inf }
 0x243   : > { %v426_v62 = vpop.f32.mrb[10].mxu1  ;;  %731 = vmax.xlane.f32.xlu1 %v730_v61  ;;  %v570_v63 = vpop.f32.mrb[10].mxu0 }
 0x244   : > { %v2458_v0 = vpop.f32.mrb[11].mxu1  ;;  %v2476_v1 = vpop.f32.mrb[11].mxu0 }
 0x247   : > { %722 = vmax.xlane.f32.xlu1 %v721_v2 }
 0x249   : > { %v2911_v3 = vpop.f32.mrb[12].mxu1  ;;  %v2913_v4 = vpop.f32.mrb[12].mxu0 }
 0x24a   : > { %v2469_v5 = vpop.f32.mrb[13].mxu1  ;;  %v2487_v6 = vpop.f32.mrb[13].mxu0  ;;  %v727_v22 = vsel %vm717_vm3, %v2911_v3, -inf  ;;  %v736_v31 = vsel %vm717_vm3, %v2913_v4, -inf }
 0x24b   : > { %v522_v7 = vpop.f32.mrb[14].mxu1  ;;  %v666_v8 = vpop.f32.mrb[14].mxu0 }
 0x24c   : > { %v2470_v9 = vpop.f32.mrb[15].mxu1  ;;  %v2488_v10 = vpop.f32.mrb[15].mxu0 }
 0x251   : > { %v2915_v11 = vpop.f32.mrb[16].mxu1 }
 0x252   : > { %v2481_v12 = vpop.f32.mrb[17].mxu1  ;;  %v733_v23 = vsel %vm717_vm3, %v2915_v11, -inf }
 0x253   : > { %v618_v13 = vpop.f32.mrb[18].mxu1 }
 0x254   : > { %863 = vrot.lane.b32.xlu0 %v2840_v26, %s2770_s27  ;;  %v2482_v15 = vpop.f32.mrb[19].mxu1 }
 0x258   : > { %814 = vrot.lane.b32.xlu1 %v2834_v19, %s2770_s27 }
 0x259   : > { %v2921_v17 = vpop.f32.mrb[20].mxu1 }
 0x25a   : > { %v2493_v18 = vpop.f32.mrb[21].mxu1  ;;  %v739_v24 = vsel %vm717_vm3, %v2921_v17, -inf }
 0x25b   : > { %v714_v20 = vpop.f32.mrb[22].mxu1 }
 0x25c   : > { %v2494_v21 = vpop.f32.mrb[23].mxu1 }
 0x273   : > { %728 = vmax.xlane.f32.xlu0 %v727_v22 }
 0x277   : > { %734 = vmax.xlane.f32.xlu0 %v733_v23 }
 0x27b   : > { %740 = vmax.xlane.f32.xlu0 %v739_v24 }
 0x27c   : > { %737 = vmax.xlane.f32.xlu1 %v736_v31 }
 0x28d   : > { %911 = vrot.lane.b32.xlu1 %v2832_v16, %s2770_s27 }
 0x291   : > { %1007 = vrot.lane.b32.xlu0 %v2846_v28, %s2770_s27  ;;  %959 = vrot.lane.b32.xlu1 %v2838_v25, %s2770_s27 }
 0x295   : > { %1055 = vrot.lane.b32.xlu1 %v2843_v27, %s2770_s27 }
 0x2c7   : > { %v726_v32 = vpop.xlane.xlu0 %725 }
 0x2c8   : > { %v744_v33 = vsub.f32 %v471_v47, %v726_v32 }
 0x2ca   : > { %v754_v34 = vmul.f32 1.442695, %v744_v33 }
 0x2cb   : > { %v720_v35 = vpop.xlane.xlu0 %719 }
 0x2cc   : > { %2695 = vpow2.f32 %v754_v34  ;;  %v742_v36 = vsub.f32 %v375_v48, %v720_v35 }
 0x2ce   : > { %v750_v37 = vmul.f32 1.442695, %v742_v36 }
 0x2cf   : > { %v864_v38 = vpop.permute.xlu0 %863 }
 0x2d0   : > { %2697 = vpow2.f32 %v750_v37  ;;  %v869_v39 = vsel %vm819_vm4, %v864_v38, 0  ;;  %v732_v40 = vpop.xlane.xlu1 %731 }
 0x2d1   : > { %v746_v41 = vsub.f32 %v567_v58, %v732_v40  ;;  %2502 = vmatpush3.bf16.msra.mxu1 %v869_v39 }
 0x2d2   : > { %2513 = vmatprep.subr.bf16.mxu1 %v2767_v14 }
 0x2d3   : > { %v758_v42 = vmul.f32 1.442695, %v746_v41 }
 0x2d4   : > { %v723_v43 = vpop.xlane.xlu1 %722 }
 0x2d5   : > { %2699 = vpow2.f32 %v758_v42  ;;  %v743_v44 = vsub.f32 %v2906_v57, %v723_v43 }
 0x2d6   : > { %v2942_v45 = vpop.eup %2695 }
 0x2d7   : > { %v752_v46 = vmul.f32 1.442695, %v743_v44  ;;  %v772_v47 = vsel %vm717_vm3, %v2942_v45, 0.0 }
 0x2d8   : > { %v815_v48 = vpop.permute.xlu1 %814  ;;  %773 = vadd.xlane.f32.xlu1 %v772_v47 }
 0x2d9   : > { %2701 = vpow2.f32 %v752_v46  ;;  %v821_v49 = vsel %vm819_vm4, %v815_v48, 0 }
 0x2da   : > { %v2947_v50 = vpop.eup %2697  ;;  %2496 = vmatpush3.bf16.msra.mxu0 %v821_v49 }
 0x2db   : > { %v766_v51 = vsel %vm717_vm3, %v2947_v50, 0.0  ;;  %2507 = vmatprep.subr.bf16.mxu0 %v2767_v14 }
 0x2dc   : > { %767 = vadd.xlane.f32.xlu1 %v766_v51 }
 0x2df   : > { %v2952_v52 = vpop.eup %2699 }
 0x2e0   : > { %v778_v53 = vsel %vm717_vm3, %v2952_v52, 0.0 }
 0x2e1   : > { %779 = vadd.xlane.f32.xlu1 %v778_v53 }
 0x2e3   : > { %v2956_v54 = vpop.eup %2701 }
 0x2e4   : > { %v769_v55 = vsel %vm717_vm3, %v2956_v54, 0.0 }
 0x2e5   : > { %770 = vadd.xlane.f32.xlu0 %v769_v55 }
 0x300   : > { %v729_v56 = vpop.xlane.xlu0 %728 }
 0x301   : > { %v745_v57 = vsub.f32 %v2911_v3, %v729_v56 }
 0x303   : > { %v756_v58 = vmul.f32 1.442695, %v745_v57 }
 0x304   : > { %v735_v59 = vpop.xlane.xlu0 %734 }
 0x305   : > { %2703 = vpow2.f32 %v756_v58  ;;  %v747_v60 = vsub.f32 %v2915_v11, %v735_v59 }
 0x307   : > { %v760_v61 = vmul.f32 1.442695, %v747_v60 }
 0x309   : > { %2705 = vpow2.f32 %v760_v61  ;;  %v738_v62 = vpop.xlane.xlu1 %737 }
 0x30a   : > { %v748_v63 = vsub.f32 %v2913_v4, %v738_v62  ;;  %v741_v4 = vpop.xlane.xlu0 %740 }
 0x30b   : > { %v749_v8 = vsub.f32 %v2921_v17, %v741_v4 }
 0x30c   : > { %v762_v0 = vmul.f32 1.442695, %v748_v63 }
 0x30d   : > { %v764_v9 = vmul.f32 1.442695, %v749_v8  ;;  %v912_v12 = vpop.permute.xlu1 %911 }
 0x30e   : > { %2707 = vpow2.f32 %v762_v0  ;;  %v1008_v20 = vpop.permute.xlu0 %1007  ;;  %v917_v32 = vsel %vm819_vm4, %v912_v12, 0 }
 0x30f   : > { %v2963_v1 = vpop.eup %2703  ;;  %2709 = vpow2.f32 %v764_v9  ;;  %v1013_v39 = vsel %vm819_vm4, %v1008_v20, 0 }
 0x310   : > { %v775_v2 = vsel %vm717_vm3, %v2963_v1, 0.0 }
 0x311   : > { %776 = vadd.xlane.f32.xlu0 %v775_v2  ;;  %v960_v13 = vpop.permute.xlu1 %959 }
 0x312   : > { %v965_v40 = vsel %vm819_vm4, %v960_v13, 0 }
 0x313   : > { %v2967_v5 = vpop.eup %2705 }
 0x314   : > { %v781_v3 = vsel %vm717_vm3, %v2967_v5, 0.0 }
 0x315   : > { %782 = vadd.xlane.f32.xlu0 %v781_v3  ;;  %v1056_v15 = vpop.permute.xlu1 %1055 }
 0x318   : > { %v2971_v6 = vpop.eup %2707 }
 0x319   : > { %v784_v7 = vsel %vm717_vm3, %v2971_v6, 0.0  ;;  %v2992_v10 = vpop.eup %2709 }
 0x31a   : > { %785 = vadd.xlane.f32.xlu1 %v784_v7  ;;  %v787_v11 = vsel %vm717_vm3, %v2992_v10, 0.0 }
 0x32b   : > { %1151 = vrot.lane.b32.xlu1 %v2848_v29, %s2770_s27  ;;  %1103 = vrot.lane.b32.xlu0 %v2851_v30, %s2770_s27 }
 0x32f   : > { %1251 = vrot.lane.b32.xlu1 %v2840_v26, %s2771_s28 }
 0x333   : > { %1249 = vrot.lane.b32.xlu1 %v2840_v26, %s2772_s29 }
 0x337   : > { %1351 = vrot.lane.b32.xlu1 %v2838_v25, %s2771_s28 }
 0x33b   : > { %1349 = vrot.lane.b32.xlu1 %v2838_v25, %s2772_s29 }
 0x33f   : > { %1451 = vrot.lane.b32.xlu1 %v2843_v27, %s2771_s28 }
 0x343   : > { %1449 = vrot.lane.b32.xlu1 %v2843_v27, %s2772_s29 }
 0x347   : > { %1551 = vrot.lane.b32.xlu1 %v2848_v29, %s2771_s28 }
 0x34a   : > { %788 = vadd.xlane.f32.xlu0 %v787_v11 }
 0x34b   : > { %1549 = vrot.lane.b32.xlu1 %v2848_v29, %s2772_s29 }
 0x34f   : > { %1695 = vrot.lane.b32.xlu1 %v2834_v19, %s2773_s30 }
 0x360   : > { %1201 = vrot.lane.b32.xlu0 %v2834_v19, %s2771_s28 }
 0x364   : > { %1199 = vrot.lane.b32.xlu0 %v2834_v19, %s2772_s29 }
 0x365   : > { %v774_v17 = vpop.xlane.xlu1 %773 }
 0x368   : > { %1301 = vrot.lane.b32.xlu0 %v2832_v16, %s2771_s28 }
 0x369   : > { %v768_v18 = vpop.xlane.xlu1 %767 }
 0x36a   : > { %2711 = vrcp.f32 %v768_v18 }
 0x36b   : > { %2713 = vrcp.f32 %v774_v17 }
 0x36c   : > { %1299 = vrot.lane.b32.xlu0 %v2832_v16, %s2772_s29 }
 0x36e   : > { %v780_v22 = vpop.xlane.xlu1 %779 }
 0x370   : > { %1401 = vrot.lane.b32.xlu0 %v2846_v28, %s2771_s28 }
 0x372   : > { %v771_v21 = vpop.xlane.xlu0 %770 }
 0x373   : > { %2715 = vrcp.f32 %v771_v21 }
 0x374   : > { %v2712_v23 = vpop.eup %2711  ;;  %1399 = vrot.lane.b32.xlu0 %v2846_v28, %s2772_s29  ;;  %2717 = vrcp.f32 %v780_v22 }
 0x375   : > { %v791_v19 = vmul.f32 %v2712_v23, %v2947_v50  ;;  %v2714_v31 = vpop.eup %2713 }
 0x376   : > { %v795_v33 = vmul.f32 %v2714_v31, %v2942_v45 }
 0x377   : > { %v806_v24 = vpack.c.bf16 %v791_v19, %v791_v19 }
 0x378   : > { %1501 = vrot.lane.b32.xlu0 %v2851_v30, %s2771_s28  ;;  %v808_v36 = vpack.c.bf16 %v795_v33, %v795_v33 }
 0x379   : > { %2498 = vmatmul.mubr.msk.bf16.vlgmr.msra.gmra.mrb[16].mxu0 %vm717_vm3, %v806_v24 }
 0x37a   : > { %2508 = vmatpush3.bf16.msra.mxu0 %v917_v32  ;;  %2509 = vmatprep.mubr.msk.bf16.mxu0 %vm2768_vm1, %v2767_v14 }
 0x37b   : > { %2519 = vmatprep.subr.bf16.mxu0 %v2767_v14 }
 0x37c   : > { %1499 = vrot.lane.b32.xlu0 %v2851_v30, %s2772_s29 }
 0x37d   : > { %v2716_v34 = vpop.eup %2715 }
 0x37e   : > { %v793_v35 = vmul.f32 %v2716_v34, %v2956_v54  ;;  %v2718_v37 = vpop.eup %2717 }
 0x37f   : > { %v799_v41 = vmul.f32 %v2718_v37, %v2952_v52  ;;  %v1061_v52 = vsel %vm819_vm4, %v1056_v15, 0 }
 0x380   : > { %v807_v38 = vpack.c.bf16 %v793_v35, %v793_v35 }
 0x381   : > { %2510 = vmatmul.mubr.msk.bf16.vlgmr.msra.gmra.mrb[20].mxu0 %vm717_vm3, %v808_v36  ;;  %v810_v42 = vpack.c.bf16 %v799_v41, %v799_v41 }
 0x382   : > { %2520 = vmatpush3.bf16.msra.mxu0 %v1013_v39  ;;  %2504 = vmatmul.mubr.msk.bf16.vlgmr.msra.gmra.mrb[24].mxu1 %vm717_vm3, %v807_v38 }
 0x383   : > { %2514 = vmatpush3.bf16.msra.mxu1 %v965_v40  ;;  %2521 = vmatprep.mubr.msk.bf16.mxu0 %vm2768_vm1, %v2767_v14 }
 0x384   : > { %2531 = vmatprep.subr.bf16.mxu0 %v2767_v14  ;;  %2515 = vmatprep.mubr.msk.bf16.mxu1 %vm2768_vm1, %v2767_v14 }
 0x385   : > { %2525 = vmatprep.subr.bf16.mxu1 %v2767_v14 }
 0x389   : > { %2522 = vmatmul.mubr.msk.bf16.vlgmr.msra.gmra.mrb[24].mxu0 %vm717_vm3, %v810_v42 }
 0x38a   : > { %2533 = vmatprep.mubr.msk.bf16.mxu0 %vm2768_vm1, %v2767_v14 }
 0x39e   : > { %v777_v43 = vpop.xlane.xlu0 %776 }
 0x39f   : > { %2719 = vrcp.f32 %v777_v43 }
 0x3a2   : > { %v783_v44 = vpop.xlane.xlu0 %782 }
 0x3a3   : > { %2721 = vrcp.f32 %v783_v44 }
 0x3a6   : > { %v1104_v45 = vpop.permute.xlu0 %1103 }
 0x3a7   : > { %v1109_v46 = vsel %vm819_vm4, %v1104_v45, 0  ;;  %v786_v47 = vpop.xlane.xlu1 %785 }
 0x3a8   : > { %2723 = vrcp.f32 %v786_v47  ;;  %2532 = vmatpush3.bf16.msra.mxu0 %v1109_v46 }
 0x3a9   : > { %v2720_v48 = vpop.eup %2719  ;;  %2543 = vmatprep.subr.bf16.mxu0 %v2767_v14 }
 0x3aa   : > { %v797_v49 = vmul.f32 %v2720_v48, %v2963_v1 }
 0x3ab   : > { %v1152_v56 = vpop.permute.xlu1 %1151 }
 0x3ac   : > { %v809_v50 = vpack.c.bf16 %v797_v49, %v797_v49  ;;  %v1157_v59 = vsel %vm819_vm4, %v1152_v56, 0 }
 0x3ad   : > { %v2722_v51 = vpop.eup %2721 }
 0x3ae   : > { %2516 = vmatmul.mubr.msk.bf16.vlgmr.msra.gmra.mrb[28].mxu1 %vm717_vm3, %v809_v50  ;;  %v801_v53 = vmul.f32 %v2722_v51, %v2967_v5 }
 0x3af   : > { %2526 = vmatpush3.bf16.msra.mxu1 %v1061_v52  ;;  %2527 = vmatprep.mubr.msk.bf16.mxu1 %vm2768_vm1, %v2767_v14  ;;  %v1252_v60 = vpop.permute.xlu1 %1251 }
 0x3b0   : > { %2537 = vmatprep.subr.bf16.mxu1 %v2767_v14  ;;  %v811_v57 = vpack.c.bf16 %v801_v53, %v801_v53  ;;  %v1257_v11 = vsel %vm334_vm2, %v1252_v60, 0 }
 0x3b2   : > { %v2724_v54 = vpop.eup %2723 }
 0x3b3   : > { %v803_v55 = vmul.f32 %v2724_v54, %v2971_v6  ;;  %v1250_v61 = vpop.permute.xlu1 %1249 }
 0x3b5   : > { %v812_v58 = vpack.c.bf16 %v803_v55, %v803_v55 }
 0x3b6   : > { %2528 = vmatmul.mubr.msk.bf16.vlgmr.msra.gmra.mrb[32].mxu1 %vm717_vm3, %v811_v57 }
 0x3b7   : > { %2538 = vmatpush3.bf16.msra.mxu1 %v1157_v59  ;;  %2534 = vmatmul.mubr.msk.bf16.vlgmr.msra.gmra.mrb[28].mxu0 %vm717_vm3, %v812_v58  ;;  %v1352_v62 = vpop.permute.xlu1 %1351 }
 0x3b8   : > { %2545 = vmatprep.mubr.msk.bf16.mxu0 %vm2768_vm1, %v2767_v14  ;;  %2539 = vmatprep.mubr.msk.bf16.mxu1 %vm2768_vm1, %v2767_v14  ;;  %v1357_v18 = vsel %vm334_vm2, %v1352_v62, 0 }
 0x3b9   : > { %2549 = vmatprep.subr.bf16.mxu1 %v2767_v14 }
 0x3bb   : > { %v1350_v0 = vpop.permute.xlu1 %1349 }
 0x3bf   : > { %v1452_v3 = vpop.permute.xlu1 %1451 }
 0x3c0   : > { %v1457_v19 = vsel %vm334_vm2, %v1452_v3, 0 }
 0x3c3   : > { %v1450_v12 = vpop.permute.xlu1 %1449 }
 0x3c7   : > { %v1552_v17 = vpop.permute.xlu1 %1551 }
 0x3c8   : > { %v1557_v33 = vsel %vm334_vm2, %v1552_v17, 0 }
 0x3cb   : > { %v1550_v21 = vpop.permute.xlu1 %1549 }
 0x3cf   : > { %v1696_v24 = vpop.permute.xlu1 %1695 }
 0x3d0   : > { %v1701_v32 = vsel %vm819_vm4, %v1696_v24, 0 }
 0x3d7   : > { %v789_v63 = vpop.xlane.xlu0 %788 }
 0x3d8   : > { %2725 = vrcp.f32 %v789_v63 }
 0x3db   : > { %v1202_v1 = vpop.permute.xlu0 %1201 }
 0x3dc   : > { %v1207_v2 = vsel %vm334_vm2, %v1202_v1, 0 }
 0x3dd   : > { %2544 = vmatpush3.bf16.xpose.msra.mxu0 %v1207_v2 }
 0x3de   : > { %2555 = vmatprep.subr.bf16.mxu0 %v2767_v14 }
 0x3df   : > { %v1200_v5 = vpop.permute.xlu0 %1199 }
 0x3e2   : > { %v2726_v6 = vpop.eup %2725 }
 0x3e3   : > { %v805_v7 = vmul.f32 %v2726_v6, %v2992_v10  ;;  %v1302_v4 = vpop.permute.xlu0 %1301 }
 0x3e4   : > { %v1307_v8 = vsel %vm334_vm2, %v1302_v4, 0  ;;  %2546 = vmatmul.mubr.msk.bf16.vlgmr.msra.gmra.mrb[32].mxu0 %vm334_vm2, %v1200_v5 }
 0x3e5   : > { %2556 = vmatpush3.bf16.xpose.msra.mxu0 %v1307_v8  ;;  %v813_v9 = vpack.c.bf16 %v805_v7, %v805_v7  ;;  %2557 = vmatprep.mubr.msk.bf16.mxu0 %vm2768_vm1, %v2767_v14 }
 0x3e6   : > { %2567 = vmatprep.subr.bf16.mxu0 %v2767_v14 }
 0x3e7   : > { %2540 = vmatmul.mubr.msk.bf16.vlgmr.msra.gmra.mrb[36].mxu1 %vm717_vm3, %v813_v9  ;;  %v1300_v13 = vpop.permute.xlu0 %1299 }
 0x3e8   : > { %2550 = vmatpush3.bf16.xpose.msra.mxu1 %v1257_v11  ;;  %2551 = vmatprep.mubr.msk.bf16.mxu1 %vm2768_vm1, %v2767_v14 }
 0x3e9   : > { %2561 = vmatprep.subr.bf16.mxu1 %v2767_v14 }
 0x3eb   : > { %v1402_v10 = vpop.permute.xlu0 %1401 }
 0x3ec   : > { %v1407_v15 = vsel %vm334_vm2, %v1402_v10, 0  ;;  %2558 = vmatmul.mubr.msk.bf16.vlgmr.msra.gmra.mrb[36].mxu0 %vm334_vm2, %v1300_v13 }
 0x3ed   : > { %2568 = vmatpush3.bf16.xpose.msra.mxu0 %v1407_v15  ;;  %2569 = vmatprep.mubr.msk.bf16.mxu0 %vm2768_vm1, %v2767_v14 }
 0x3ee   : > { %2579 = vmatprep.subr.bf16.mxu0 %v2767_v14 }
 0x3ef   : > { %2552 = vmatmul.mubr.msk.bf16.vlgmr.msra.gmra.mrb[40].mxu1 %vm334_vm2, %v1250_v61  ;;  %v1400_v20 = vpop.permute.xlu0 %1399 }
 0x3f0   : > { %2562 = vmatpush3.bf16.xpose.msra.mxu1 %v1357_v18  ;;  %2563 = vmatprep.mubr.msk.bf16.mxu1 %vm2768_vm1, %v2767_v14 }
 0x3f1   : > { %2573 = vmatprep.subr.bf16.mxu1 %v2767_v14 }
 0x3f3   : > { %v1502_v22 = vpop.permute.xlu0 %1501 }
 0x3f4   : > { %v1507_v23 = vsel %vm334_vm2, %v1502_v22, 0  ;;  %2570 = vmatmul.mubr.msk.bf16.vlgmr.msra.gmra.mrb[40].mxu0 %vm334_vm2, %v1400_v20 }
 0x3f5   : > { %2580 = vmatpush3.bf16.xpose.msra.mxu0 %v1507_v23  ;;  %2581 = vmatprep.mubr.msk.bf16.mxu0 %vm2768_vm1, %v2767_v14 }
 0x3f6   : > { %2591 = vmatprep.subr.bf16.mxu0 %v2767_v14 }
 0x3f7   : > { %2564 = vmatmul.mubr.msk.bf16.vlgmr.msra.gmra.mrb[44].mxu1 %vm334_vm2, %v1350_v0  ;;  %v1500_v31 = vpop.permute.xlu0 %1499 }
 0x3f8   : > { %2574 = vmatpush3.bf16.xpose.msra.mxu1 %v1457_v19  ;;  %2575 = vmatprep.mubr.msk.bf16.mxu1 %vm2768_vm1, %v2767_v14 }
 0x3f9   : > { %2585 = vmatprep.subr.bf16.mxu1 %v2767_v14 }
 0x3fc   : > { %2582 = vmatmul.mubr.msk.bf16.vlgmr.msra.gmra.mrb[44].mxu0 %vm334_vm2, %v1500_v31 }
 0x3fd   : > { %2592 = vmatpush3.bf16.msra.mxu0 %v1701_v32  ;;  %2593 = vmatprep.mubr.msk.bf16.mxu0 %vm2768_vm1, %v2767_v14 }
 0x3fe   : > { %2603 = vmatprep.subr.bf16.mxu0 %v2767_v14 }
 0x3ff   : > { %2576 = vmatmul.mubr.msk.bf16.vlgmr.msra.gmra.mrb[48].mxu1 %vm334_vm2, %v1450_v12 }
 0x400   : > { %2586 = vmatpush3.bf16.xpose.msra.mxu1 %v1557_v33  ;;  %2587 = vmatprep.mubr.msk.bf16.mxu1 %vm2768_vm1, %v2767_v14 }
 0x401   : > { %2597 = vmatprep.subr.bf16.mxu1 %v2767_v14 }
 0x407   : > { %2588 = vmatmul.mubr.msk.bf16.vlgmr.msra.gmra.mrb[52].mxu1 %vm334_vm2, %v1550_v21 }
 0x408   : > { %2599 = vmatprep.mubr.msk.bf16.mxu1 %vm2768_vm1, %v2767_v14 }
 0x44c   : > { %v3104_v34 = vpop.f32.mrb[16].mxu0 }
 0x44d   : > { %v2499_v35 = vpop.f32.mrb[17].mxu0 }
 0x44e   : > { %v860_v36 = vpop.f32.mrb[18].mxu0 }
 0x44f   : > { %v2500_v37 = vpop.f32.mrb[19].mxu0 }
 0x454   : > { %v3106_v38 = vpop.f32.mrb[20].mxu0 }
 0x455   : > { %v3108_v39 = vpop.f32.mrb[24].mxu1  ;;  %v2511_v40 = vpop.f32.mrb[21].mxu0 }
 0x456   : > { %v2505_v41 = vpop.f32.mrb[25].mxu1  ;;  %v956_v42 = vpop.f32.mrb[22].mxu0 }
 0x457   : > { %v908_v43 = vpop.f32.mrb[26].mxu1  ;;  %v2512_v44 = vpop.f32.mrb[23].mxu0 }
 0x458   : > { %v2506_v45 = vpop.f32.mrb[27].mxu1 }
 0x45c   : > { %v3110_v46 = vpop.f32.mrb[24].mxu0 }
 0x45d   : > { %v2523_v47 = vpop.f32.mrb[25].mxu0 }
 0x45e   : > { %v1052_v48 = vpop.f32.mrb[26].mxu0 }
 0x45f   : > { %v2524_v49 = vpop.f32.mrb[27].mxu0 }
 0x481   : > { %v3112_v50 = vpop.f32.mrb[28].mxu1 }
 0x482   : > { %v2517_v51 = vpop.f32.mrb[29].mxu1 }
 0x483   : > { %v1004_v52 = vpop.f32.mrb[30].mxu1 }
 0x484   : > { %v2518_v53 = vpop.f32.mrb[31].mxu1 }
 0x489   : > { %v3114_v54 = vpop.f32.mrb[32].mxu1 }
 0x48a   : > { %v2529_v55 = vpop.f32.mrb[33].mxu1  ;;  %v3116_v56 = vpop.f32.mrb[28].mxu0 }
 0x48b   : > { %v1100_v57 = vpop.f32.mrb[34].mxu1  ;;  %v2535_v58 = vpop.f32.mrb[29].mxu0 }
 0x48c   : > { %v2530_v59 = vpop.f32.mrb[35].mxu1  ;;  %v1148_v60 = vpop.f32.mrb[30].mxu0 }
 0x48d   : > { %v2536_v61 = vpop.f32.mrb[31].mxu0 }
 0x4b7   : > { %v1243_v62 = vpop.f32.mrb[32].mxu0 }
 0x4b8   : > { %v2547_v63 = vpop.f32.mrb[33].mxu0  ;;  %v1599_v0 = vsel %vm717_vm3, %v1243_v62, -inf }
 0x4b9   : > { %1600 = vmax.xlane.f32.xlu0 %v1599_v0  ;;  %v1246_v1 = vpop.f32.mrb[34].mxu0 }
 0x4ba   : > { %v3119_v2 = vpop.f32.mrb[36].mxu1  ;;  %v2548_v5 = vpop.f32.mrb[35].mxu0 }
 0x4bb   : > { %v2541_v3 = vpop.f32.mrb[37].mxu1 }
 0x4bc   : > { %v1196_v6 = vpop.f32.mrb[38].mxu1 }
 0x4bd   : > { %v2542_v7 = vpop.f32.mrb[39].mxu1 }
 0x4bf   : > { %v1343_v4 = vpop.f32.mrb[36].mxu0 }
 0x4c0   : > { %v2559_v8 = vpop.f32.mrb[37].mxu0  ;;  %v1605_v9 = vsel %vm717_vm3, %v1343_v4, -inf }
 0x4c1   : > { %1606 = vmax.xlane.f32.xlu0 %v1605_v9  ;;  %v1346_v11 = vpop.f32.mrb[38].mxu0 }
 0x4c2   : > { %v1293_v12 = vpop.f32.mrb[40].mxu1  ;;  %v2560_v13 = vpop.f32.mrb[39].mxu0 }
 0x4c3   : > { %v2553_v10 = vpop.f32.mrb[41].mxu1  ;;  %v1602_v15 = vsel %vm717_vm3, %v1293_v12, -inf }
 0x4c4   : > { %1603 = vmax.xlane.f32.xlu1 %v1602_v15  ;;  %v1296_v17 = vpop.f32.mrb[42].mxu1 }
 0x4c5   : > { %v2554_v18 = vpop.f32.mrb[43].mxu1 }
 0x4c7   : > { %v3123_v20 = vpop.f32.mrb[40].mxu0 }
 0x4c8   : > { %v2571_v21 = vpop.f32.mrb[41].mxu0  ;;  %v1611_v22 = vsel %vm717_vm3, %v3123_v20, -inf }
 0x4c9   : > { %1612 = vmax.xlane.f32.xlu1 %v1611_v22  ;;  %v1446_v23 = vpop.f32.mrb[42].mxu0 }
 0x4ca   : > { %v1393_v19 = vpop.f32.mrb[44].mxu1  ;;  %v2572_v24 = vpop.f32.mrb[43].mxu0 }
 0x4cb   : > { %v2565_v31 = vpop.f32.mrb[45].mxu1  ;;  %v1608_v32 = vsel %vm717_vm3, %v1393_v19, -inf }
 0x4cc   : > { %v1396_v33 = vpop.f32.mrb[46].mxu1  ;;  %1609 = vmax.xlane.f32.xlu0 %v1608_v32 }
 0x4cd   : > { %v2566_v35 = vpop.f32.mrb[47].mxu1 }
 0x4cf   : > { %v3128_v36 = vpop.f32.mrb[44].mxu0 }
 0x4d0   : > { %v2583_v37 = vpop.f32.mrb[45].mxu0  ;;  %v1617_v40 = vsel %vm717_vm3, %v3128_v36, -inf }
 0x4d1   : > { %1618 = vmax.xlane.f32.xlu1 %v1617_v40  ;;  %v1546_v41 = vpop.f32.mrb[46].mxu0 }
 0x4d2   : > { %v1493_v42 = vpop.f32.mrb[48].mxu1  ;;  %v2584_v43 = vpop.f32.mrb[47].mxu0 }
 0x4d3   : > { %v2577_v44 = vpop.f32.mrb[49].mxu1  ;;  %v1614_v45 = vsel %vm717_vm3, %v1493_v42, -inf }
 0x4d4   : > { %v1496_v47 = vpop.f32.mrb[50].mxu1  ;;  %1615 = vmax.xlane.f32.xlu0 %v1614_v45 }
 0x4d5   : > { %v2578_v48 = vpop.f32.mrb[51].mxu1 }
 0x4da   : > { %v1593_v49 = vpop.f32.mrb[52].mxu1 }
 0x4db   : > { %v2589_v51 = vpop.f32.mrb[53].mxu1  ;;  %v1620_v52 = vsel %vm717_vm3, %v1593_v49, -inf }
 0x4dc   : > { %v1596_v53 = vpop.f32.mrb[54].mxu1  ;;  %1621 = vmax.xlane.f32.xlu0 %v1620_v52 }
 0x4dd   : > { %v2590_v55 = vpop.f32.mrb[55].mxu1 }
 0x4e2   : > { %1791 = vrot.lane.b32.xlu1 %v2832_v16, %s2773_s30 }
 0x4e6   : > { %1839 = vrot.lane.b32.xlu1 %v2838_v25, %s2773_s30 }
 0x4f2   : > { %1743 = vrot.lane.b32.xlu0 %v2840_v26, %s2773_s30 }
 0x546   : > { %v1601_v57 = vpop.xlane.xlu0 %1600 }
 0x547   : > { %v1623_v58 = vsub.f32 %v1243_v62, %v1601_v57 }
 0x549   : > { %v1631_v59 = vmul.f32 1.442695, %v1623_v58 }
 0x54b   : > { %2727 = vpow2.f32 %v1631_v59 }
 0x54e   : > { %v1607_v60 = vpop.xlane.xlu0 %1606 }
 0x54f   : > { %v1625_v61 = vsub.f32 %v1343_v4, %v1607_v60 }
 0x551   : > { %v1635_v63 = vmul.f32 1.442695, %v1625_v61  ;;  %v1604_v0 = vpop.xlane.xlu1 %1603 }
 0x552   : > { %v1624_v1 = vsub.f32 %v1293_v12, %v1604_v0 }
 0x553   : > { %2729 = vpow2.f32 %v1635_v63 }
 0x554   : > { %v1633_v5 = vmul.f32 1.442695, %v1624_v1 }
 0x555   : > { %v2728_v3 = vpop.eup %2727 }
 0x556   : > { %2731 = vpow2.f32 %v1633_v5  ;;  %v1647_v16 = vsel %vm717_vm3, %v2728_v3, 0.0  ;;  %v1613_v17 = vpop.xlane.xlu1 %1612 }
 0x557   : > { %1648 = vadd.xlane.f32.xlu1 %v1647_v16  ;;  %v1627_v18 = vsub.f32 %v3123_v20, %v1613_v17 }
 0x559   : > { %v1610_v25 = vpop.xlane.xlu0 %1609  ;;  %v1639_v22 = vmul.f32 1.442695, %v1627_v18 }
 0x55a   : > { %v1626_v6 = vsub.f32 %v1393_v19, %v1610_v25 }
 0x55c   : > { %v1637_v7 = vmul.f32 1.442695, %v1626_v6 }
 0x55d   : > { %v3141_v26 = vpop.eup %2729 }
 0x55e   : > { %2733 = vpow2.f32 %v1637_v7  ;;  %v1653_v62 = vsel %vm717_vm3, %v3141_v26, 0.0  ;;  %v1619_v21 = vpop.xlane.xlu1 %1618 }
 0x55f   : > { %1654 = vadd.xlane.f32.xlu1 %v1653_v62  ;;  %v1629_v23 = vsub.f32 %v3128_v36, %v1619_v21  ;;  %2735 = vpow2.f32 %v1639_v22 }
 0x560   : > { %v3145_v4 = vpop.eup %2731 }
 0x561   : > { %v1650_v8 = vsel %vm717_vm3, %v3145_v4, 0.0  ;;  %v1616_v9 = vpop.xlane.xlu0 %1615  ;;  %v1643_v19 = vmul.f32 1.442695, %v1629_v23 }
 0x562   : > { %1651 = vadd.xlane.f32.xlu0 %v1650_v8  ;;  %v1628_v24 = vsub.f32 %v1493_v42, %v1616_v9  ;;  %v1792_v42 = vpop.permute.xlu1 %1791 }
 0x563   : > { %2737 = vpow2.f32 %v1643_v19  ;;  %v1797_v52 = vsel %vm819_vm4, %v1792_v42, 0 }
 0x564   : > { %v1641_v31 = vmul.f32 1.442695, %v1628_v24 }
 0x566   : > { %2739 = vpow2.f32 %v1641_v31  ;;  %v1840_v43 = vpop.permute.xlu1 %1839 }
 0x567   : > { %v1845_v63 = vsel %vm819_vm4, %v1840_v43, 0 }
 0x568   : > { %v3149_v11 = vpop.eup %2733 }
 0x569   : > { %v1622_v12 = vpop.xlane.xlu0 %1621  ;;  %v1656_v13 = vsel %vm717_vm3, %v3149_v11, 0.0  ;;  %v3161_v33 = vpop.eup %2735 }
 0x56a   : > { %1657 = vadd.xlane.f32.xlu0 %v1656_v13  ;;  %v1630_v32 = vsub.f32 %v1593_v49, %v1622_v12  ;;  %v1659_v20 = vsel %vm717_vm3, %v3161_v33, 0.0 }
 0x56d   : > { %v1744_v10 = vpop.permute.xlu0 %1743  ;;  %v3165_v35 = vpop.eup %2737 }
 0x56e   : > { %v1749_v15 = vsel %vm819_vm4, %v1744_v10, 0 }
 0x56f   : > { %2598 = vmatpush3.bf16.msra.mxu1 %v1749_v15 }
 0x570   : > { %1935 = vrot.lane.b32.xlu1 %v2843_v27, %s2773_s30  ;;  %2609 = vmatprep.subr.bf16.mxu1 %v2767_v14  ;;  %v1645_v27 = vmul.f32 1.442695, %v1630_v32  ;;  %v3169_v36 = vpop.eup %2739 }
 0x571   : > { %v1662_v37 = vsel %vm717_vm3, %v3169_v36, 0.0 }
 0x572   : > { %2741 = vpow2.f32 %v1645_v27 }
 0x57c   : > { %v3173_v40 = vpop.eup %2741 }
 0x57d   : > { %v1668_v41 = vsel %vm717_vm3, %v3173_v40, 0.0 }
 0x580   : > { %1887 = vrot.lane.b32.xlu0 %v2846_v28, %s2773_s30  ;;  %v1665_v28 = vsel %vm717_vm3, %v3165_v35, 0.0 }
 0x594   : > { %1660 = vadd.xlane.f32.xlu1 %v1659_v20  ;;  %v2693_v20 = vld [vmem:[%s3265_s2] sm:$0xff]  }
 0x598   : > { %1666 = vadd.xlane.f32.xlu1 %v1665_v28 }
 0x59f   : > { %1663 = vadd.xlane.f32.xlu0 %v1662_v37 }
 0x5a3   : > { %1669 = vadd.xlane.f32.xlu0 %v1668_v41 }
 0x5a9   : > { %2031 = vrot.lane.b32.xlu1 %v2848_v29, %s2773_s30 }
 0x5b9   : > { %1983 = vrot.lane.b32.xlu0 %v2851_v30, %s2773_s30 }
 0x5e4   : > { %v1649_v44 = vpop.xlane.xlu1 %1648 }
 0x5e5   : > { %2743 = vrcp.f32 %v1649_v44 }
 0x5ec   : > { %v1655_v45 = vpop.xlane.xlu1 %1654 }
 0x5ed   : > { %2745 = vrcp.f32 %v1655_v45 }
 0x5ef   : > { %v2744_v47 = vpop.eup %2743  ;;  %v1652_v48 = vpop.xlane.xlu0 %1651 }
 0x5f0   : > { %v1672_v49 = vmul.f32 %v2744_v47, %v2728_v3  ;;  %2747 = vrcp.f32 %v1652_v48  ;;  %v1936_v5 = vpop.permute.xlu1 %1935 }
 0x5f1   : > { %v1941_v16 = vsel %vm819_vm4, %v1936_v5, 0 }
 0x5f2   : > { %v1687_v51 = vpack.c.bf16 %v1672_v49, %v1672_v49 }
 0x5f4   : > { %2594 = vmatmul.mubr.msk.bf16.vlgmr.msra.gmra.mrb[48].mxu0 %vm717_vm3, %v1687_v51 }
 0x5f5   : > { %2604 = vmatpush3.bf16.msra.mxu0 %v1797_v52  ;;  %2605 = vmatprep.mubr.msk.bf16.mxu0 %vm2768_vm1, %v2767_v14 }
 0x5f6   : > { %2615 = vmatprep.subr.bf16.mxu0 %v2767_v14 }
 0x5f7   : > { %v2746_v29 = vpop.eup %2745  ;;  %v1658_v30 = vpop.xlane.xlu0 %1657 }
 0x5f8   : > { %v1676_v53 = vmul.f32 %v2746_v29, %v3141_v26  ;;  %2749 = vrcp.f32 %v1658_v30 }
 0x5fa   : > { %v2748_v55 = vpop.eup %2747  ;;  %v1689_v57 = vpack.c.bf16 %v1676_v53, %v1676_v53 }
 0x5fb   : > { %v1674_v58 = vmul.f32 %v2748_v55, %v3145_v4  ;;  %v1888_v59 = vpop.permute.xlu0 %1887 }
 0x5fc   : > { %v1893_v60 = vsel %vm819_vm4, %v1888_v59, 0  ;;  %2606 = vmatmul.mubr.msk.bf16.vlgmr.msra.gmra.mrb[52].mxu0 %vm717_vm3, %v1689_v57 }
 0x5fd   : > { %2616 = vmatpush3.bf16.msra.mxu0 %v1893_v60  ;;  %v1688_v61 = vpack.c.bf16 %v1674_v58, %v1674_v58  ;;  %2617 = vmatprep.mubr.msk.bf16.mxu0 %vm2768_vm1, %v2767_v14 }
 0x5fe   : > { %2627 = vmatprep.subr.bf16.mxu0 %v2767_v14 }
 0x5ff   : > { %2600 = vmatmul.mubr.msk.bf16.vlgmr.msra.gmra.mrb[56].mxu1 %vm717_vm3, %v1688_v61 }
 0x600   : > { %2610 = vmatpush3.bf16.msra.mxu1 %v1845_v63  ;;  %2611 = vmatprep.mubr.msk.bf16.mxu1 %vm2768_vm1, %v2767_v14 }
 0x601   : > { %2621 = vmatprep.subr.bf16.mxu1 %v2767_v14 }
 0x602   : > { %v2750_v0 = vpop.eup %2749 }
 0x603   : > { %v1678_v1 = vmul.f32 %v2750_v0, %v3149_v11 }
 0x605   : > { %v1690_v3 = vpack.c.bf16 %v1678_v1, %v1678_v1 }
 0x607   : > { %2612 = vmatmul.mubr.msk.bf16.vlgmr.msra.gmra.mrb[60].mxu1 %vm717_vm3, %v1690_v3 }
 0x608   : > { %2622 = vmatpush3.bf16.msra.mxu1 %v1941_v16  ;;  %2623 = vmatprep.mubr.msk.bf16.mxu1 %vm2768_vm1, %v2767_v14 }
 0x609   : > { %2633 = vmatprep.subr.bf16.mxu1 %v2767_v14 }
 0x621   : > { %v1661_v25 = vpop.xlane.xlu1 %1660 }
 0x622   : > { %2751 = vrcp.f32 %v1661_v25 }
 0x625   : > { %v1667_v6 = vpop.xlane.xlu1 %1666 }
 0x626   : > { %2753 = vrcp.f32 %v1667_v6 }
 0x629   : > { %v2032_v18 = vpop.permute.xlu1 %2031 }
 0x62a   : > { %v2037_v23 = vsel %vm819_vm4, %v2032_v18, 0 }
 0x62c   : > { %v2752_v7 = vpop.eup %2751  ;;  %v1664_v26 = vpop.xlane.xlu0 %1663 }
 0x62d   : > { %v1680_v62 = vmul.f32 %v2752_v7, %v3161_v33  ;;  %2755 = vrcp.f32 %v1664_v26 }
 0x62f   : > { %v1691_v4 = vpack.c.bf16 %v1680_v62, %v1680_v62 }
 0x630   : > { %v2754_v8 = vpop.eup %2753  ;;  %v1670_v9 = vpop.xlane.xlu0 %1669 }
 0x631   : > { %2757 = vrcp.f32 %v1670_v9  ;;  %2618 = vmatmul.mubr.msk.bf16.vlgmr.msra.gmra.mrb[56].mxu0 %vm717_vm3, %v1691_v4  ;;  %v1684_v11 = vmul.f32 %v2754_v8, %v3165_v35 }
 0x632   : > { %2629 = vmatprep.mubr.msk.bf16.mxu0 %vm2768_vm1, %v2767_v14 }
 0x633   : > { %v1693_v15 = vpack.c.bf16 %v1684_v11, %v1684_v11 }
 0x634   : > { %v1984_v12 = vpop.permute.xlu0 %1983 }
 0x635   : > { %v1989_v13 = vsel %vm819_vm4, %v1984_v12, 0 }
 0x636   : > { %2628 = vmatpush3.bf16.msra.mxu0 %v1989_v13 }
 0x637   : > { %v2756_v10 = vpop.eup %2755  ;;  %2639 = vmatprep.subr.bf16.mxu0 %v2693_v20 }
 0x638   : > { %v1682_v17 = vmul.f32 %v2756_v10, %v3169_v36 }
 0x639   : > { %2630 = vmatmul.mubr.msk.bf16.vlgmr.msra.gmra.mrb[60].mxu0 %vm717_vm3, %v1693_v15 }
 0x63a   : > { %v1692_v21 = vpack.c.bf16 %v1682_v17, %v1682_v17  ;;  %2640 = vmatpush3.bf16.msra.mxu0 %v2693_v20 }
 0x63b   : > { %v2758_v22 = vpop.eup %2757 }
 0x63c   : > { %2624 = vmatmul.mubr.msk.bf16.vlgmr.msra.gmra.mrb[64].mxu1 %vm717_vm3, %v1692_v21  ;;  %v1686_v19 = vmul.f32 %v2758_v22, %v3173_v40 }
 0x63d   : > { %2634 = vmatpush3.bf16.msra.mxu1 %v2037_v23  ;;  %2635 = vmatprep.mubr.msk.bf16.mxu1 %vm2768_vm1, %v2767_v14  ;;  %v2694_v14 = vld [vmem:[%s3265_s2 + $0x8] sm:$0xff]  }
 0x63e   : > { %v1694_v24 = vpack.c.bf16 %v1686_v19, %v1686_v19  ;;  %2641 = vmatprep.subr.bf16.mxu0 %v2694_v14 }
 0x63f   : > { %2642 = vmatpush3.bf16.msra.mxu0 %v2694_v14 }
 0x644   : > { %2636 = vmatmul.mubr.msk.bf16.vlgmr.msra.gmra.mrb[68].mxu1 %vm717_vm3, %v1694_v24 }
 0x6c7   : > { %v1737_v31 = vpop.f32.mrb[48].mxu0 }
 0x6c8   : > { %v2595_v32 = vpop.f32.mrb[49].mxu0 }
 0x6c9   : > { %v1740_v33 = vpop.f32.mrb[50].mxu0 }
 0x6ca   : > { %v2596_v27 = vpop.f32.mrb[51].mxu0 }
 0x6cf   : > { %v1833_v35 = vpop.f32.mrb[52].mxu0 }
 0x6d0   : > { %v2607_v28 = vpop.f32.mrb[53].mxu0 }
 0x6d1   : > { %v1836_v36 = vpop.f32.mrb[54].mxu0 }
 0x6d2   : > { %v1785_v37 = vpop.f32.mrb[56].mxu1  ;;  %v2608_v40 = vpop.f32.mrb[55].mxu0 }
 0x6d3   : > { %v2671_v41 = vpack.i.bf16 %v1785_v37, %v1737_v31  ;;  %v2601_v42 = vpop.f32.mrb[57].mxu1 }
 0x6d4   : > { %v1788_v43 = vpop.f32.mrb[58].mxu1 }
 0x6d5   : > { %2672 = vrot.lane.b32.xlu0 %v2671_v41, %s2774_s9  ;;  %v2602_v44 = vpop.f32.mrb[59].mxu1 }
 0x6da   : > { %v1881_v45 = vpop.f32.mrb[60].mxu1 }
 0x6db   : > { %v2676_v47 = vpack.i.bf16 %v1881_v45, %v1833_v35  ;;  %v2613_v48 = vpop.f32.mrb[61].mxu1 }
 0x6dc   : > { %v1884_v49 = vpop.f32.mrb[62].mxu1 }
 0x6dd   : > { %2677 = vrot.lane.b32.xlu1 %v2676_v47, %s2774_s9  ;;  %v2614_v51 = vpop.f32.mrb[63].mxu1 }
 0x704   : > { %v1929_v52 = vpop.f32.mrb[56].mxu0 }
 0x705   : > { %v2619_v29 = vpop.f32.mrb[57].mxu0 }
 0x706   : > { %v1932_v30 = vpop.f32.mrb[58].mxu0 }
 0x707   : > { %v2620_v53 = vpop.f32.mrb[59].mxu0 }
 0x70c   : > { %v2025_v55 = vpop.f32.mrb[60].mxu0 }
 0x70d   : > { %v2631_v57 = vpop.f32.mrb[61].mxu0 }
 0x70e   : > { %v2028_v58 = vpop.f32.mrb[62].mxu0 }
 0x70f   : > { %v1977_v59 = vpop.f32.mrb[64].mxu1  ;;  %v2632_v60 = vpop.f32.mrb[63].mxu0 }
 0x710   : > { %v2681_v61 = vpack.i.bf16 %v1977_v59, %v1929_v52  ;;  %v2625_v63 = vpop.f32.mrb[65].mxu1 }
 0x711   : > { %v1980_v0 = vpop.f32.mrb[66].mxu1 }
 0x712   : > { %2682 = vrot.lane.b32.xlu0 %v2681_v61, %s2774_s9  ;;  %v2626_v1 = vpop.f32.mrb[67].mxu1 }
 0x717   : > { %v2073_v5 = vpop.f32.mrb[68].mxu1 }
 0x718   : > { %v2686_v3 = vpack.i.bf16 %v2073_v5, %v2025_v55  ;;  %v2637_v16 = vpop.f32.mrb[69].mxu1 }
 0x719   : > { %v2076_v25 = vpop.f32.mrb[70].mxu1 }
 0x71a   : > { %v2638_v6 = vpop.f32.mrb[71].mxu1  ;;  %2687 = vrot.lane.b32.xlu1 %v2686_v3, %s2774_s9 }
 0x747   : > { %v2673_v7 = vpop.permute.xlu0 %2672 }
 0x748   : > { %v2675_v26 = vunpack.i.h.bf16 %v2673_v7  ;;  %v2674_v62 = vunpack.i.l.bf16 %v2673_v7 }
 0x74a   : > { %v2112_v4 = vsel %vm334_vm2, %v3108_v39, %v2675_v26  ;;  %v2111_v8 = vsel %vm334_vm2, %v3104_v34, %v2674_v62 }
 0x74b   : > { %v2119_v9 = vpack.c.bf16 %v2112_v4, %v2111_v8 }
 0x74d   : > { %2643 = vmatprep.mubr.msk.bf16.mxu0 %vm230_vm0, %v2119_v9 }
 0x74f   : > { %v2678_v11 = vpop.permute.xlu1 %2677 }
 0x750   : > { %v2680_v12 = vunpack.i.h.bf16 %v2678_v11  ;;  %v2679_v13 = vunpack.i.l.bf16 %v2678_v11 }
 0x752   : > { %v2114_v10 = vsel %vm334_vm2, %v3112_v50, %v2680_v12  ;;  %v2113_v15 = vsel %vm334_vm2, %v3106_v38, %v2679_v13 }
 0x753   : > { %v2120_v17 = vpack.c.bf16 %v2114_v10, %v2113_v15 }
 0x755   : > { %2644 = vmatmul.mubr.msk.bf16.vlgmr.msra.gmra.mrb[64].mxu0 %vm230_vm0, %v2120_v17 }
 0x784   : > { %v2683_v39 = vpop.permute.xlu0 %2682 }
 0x785   : > { %v2685_v18 = vunpack.i.h.bf16 %v2683_v39  ;;  %v2684_v21 = vunpack.i.l.bf16 %v2683_v39 }
 0x787   : > { %v2116_v34 = vsel %vm334_vm2, %v3114_v54, %v2685_v18  ;;  %v2115_v22 = vsel %vm334_vm2, %v3110_v46, %v2684_v21  ;;  %v2342_v54 = vld [vmem:[%s3266_s3] ss:$0 sm:$0xff] }
 0x788   : > { %v2121_v23 = vpack.c.bf16 %v2116_v34, %v2115_v22 }
 0x78a   : > { %2647 = vmatprep.mubr.msk.bf16.mxu0 %vm230_vm0, %v2121_v23 }
 0x78c   : > { %v2688_v50 = vpop.permute.xlu1 %2687 }
 0x78d   : > { %v2690_v19 = vunpack.i.h.bf16 %v2688_v50  ;;  %v2689_v24 = vunpack.i.l.bf16 %v2688_v50 }
 0x78f   : > { %v2118_v38 = vsel %vm334_vm2, %v3119_v2, %v2690_v19  ;;  %v2117_v31 = vsel %vm334_vm2, %v3116_v56, %v2689_v24 }
 0x790   : > { %v2122_v32 = vpack.c.bf16 %v2118_v38, %v2117_v31 }
 0x792   : > { %2648 = vmatmul.mubr.msk.bf16.gmra.mrb[68].mxu0 %vm230_vm0, %v2122_v32 }
 0x828   : > { %v2645_v46 = vpop.f32.mrb[64].mxu0 }
 0x829   : > { %v2201_v33 = vadd.f32 %v2645_v46, %v2342_v54  ;;  %v2192_v27 = vpop.f32.mrb[65].mxu0 }
 0x82a   : > { %v2193_v20 = vadd.f32 %v2342_v54, %v2192_v27  ;;  %v2646_v2 = vpop.f32.mrb[66].mxu0 }
 0x82b   : > { %2225 = vst.msk [vmem:[%s199_s14 + $0x10] sm:$0xff] %vm230_vm0, %v2201_v33  ;;  %v2204_v56 = vadd.f32 %v2646_v2, %v2342_v54  ;;  %v2195_v35 = vpop.f32.mrb[67].mxu0 }
 0x82c   : > { %2223 = vst.msk [vmem:[%s199_s14] sm:$0xff] %vm230_vm0, %v2193_v20  ;;  %v2196_v28 = vadd.f32 %v2342_v54, %v2195_v35 }
 0x82d   : > { %2226 = vst.msk [vmem:[%s199_s14 + $0x18] sm:$0xff] %vm230_vm0, %v2204_v56 }
 0x82e   : > { %2224 = vst.msk [vmem:[%s199_s14 + $0x8] sm:$0xff] %vm230_vm0, %v2196_v28 }
 0x865   : > { %v2649_v14 = vpop.f32.mrb[68].mxu0 }
 0x866   : > { %v2217_v36 = vadd.f32 %v2649_v14, %v2342_v54  ;;  %v2208_v37 = vpop.f32.mrb[69].mxu0 }
 0x867   : > { %v2209_v40 = vadd.f32 %v2342_v54, %v2208_v37  ;;  %v2650_v41 = vpop.f32.mrb[70].mxu0 }
 0x868   : > { %2229 = vst.msk [vmem:[%s199_s14 + $0x30] sm:$0xff] %vm230_vm0, %v2217_v36  ;;  %v2220_v42 = vadd.f32 %v2650_v41, %v2342_v54  ;;  %v2211_v43 = vpop.f32.mrb[71].mxu0 }
 0x869   : > { %2227 = vst.msk [vmem:[%s199_s14 + $0x20] sm:$0xff] %vm230_vm0, %v2209_v40  ;;  %v2212_v44 = vadd.f32 %v2342_v54, %v2211_v43 }
 0x86a   : > { %2230 = vst.msk [vmem:[%s199_s14 + $0x38] sm:$0xff] %vm230_vm0, %v2220_v42 }
 0x86b   : > { %2228 = vst.msk [vmem:[%s199_s14 + $0x28] sm:$0xff] %vm230_vm0, %v2212_v44 }
 0x86c PF: > { %s14_s15 = sadd.s32 1, %s2765_s15  }
 0x86d   : > { %p11_p4 = scmp.ge.s32.totalorder %s14_s15, 4  }
 0x86f   :  { %13 = sbr.rel (!%p11_p4) target bundleno = 1 (0x1), region = 66 }

</bundles_post_ra>
